<compile_context>
chip_gen: v7x
topology: tpu7x:2x2x1
jax: 0.10.0
libtpu: 0.0.40
codegen_flags: <defaults>
</compile_context>

<pallas_src>
import functools

import jax
import jax.numpy as jnp
from jax.experimental import pallas as pl
from jax.experimental.pallas import tpu as pltpu

H1 = 256        # fc1 width
H2 = 128        # fc2 width
HEAD_PAD = 128  # fused actor|critic head padded to a full lane width


def _round_up(x, m):
    return ((x + m - 1) // m) * m


def actor_critic_kernel(x_ref, w_ref, b_ref, out_ref, *, sdim_pad):
    """Whole MLP for one batch tile.

    x_ref  : (tile_b, sdim_pad) f32 state (feature dim zero-padded to 8-mult)
    w_ref  : (sdim_pad + H1 + H2, H1) bf16 packed weights
             rows [0, sdim_pad)              cols [:H1]       = w1 (zero-padded rows)
             rows [sdim_pad, sdim_pad+H1)    cols [:H2]       = w2
             rows [sdim_pad+H1, ...+H2)      cols [:HEAD_PAD] = [wa | wc | 0-pad]
    b_ref  : (3, H1) f32 packed biases (b1 | b2-pad | fused head bias-pad)
    out_ref: (tile_b, HEAD_PAD) f32; cols [0,action_dim) = logits,
             col action_dim = value, remaining cols are zero.
    """
    r1 = sdim_pad
    r2 = r1 + H1
    r3 = r2 + H2

    x = x_ref[...].astype(jnp.bfloat16)

    # fc1 + relu  (bf16 MXU operands, f32 accumulate, f32 elementwise)
    h1 = jnp.dot(x, w_ref[0:r1, :], preferred_element_type=jnp.float32)
    h1 = jnp.maximum(h1 + b_ref[0:1, :], 0.0)

    # fc2 + relu
    h2 = jnp.dot(h1.astype(jnp.bfloat16), w_ref[r1:r2, 0:H2],
                 preferred_element_type=jnp.float32)
    h2 = jnp.maximum(h2 + b_ref[1:2, 0:H2], 0.0)

    # fused actor|critic head (single MXU matmul, lane-dense 128-wide output)
    out = jnp.dot(h2.astype(jnp.bfloat16), w_ref[r2:r3, 0:HEAD_PAD],
                  preferred_element_type=jnp.float32)
    out_ref[...] = out + b_ref[2:3, 0:HEAD_PAD]


def actor_critic_forward(state, w_packed, b_packed, action_dim):
    """state: (B, state_dim) f32. Returns (logits (B, action_dim), value (B, 1))."""
    B, state_dim = state.shape
    sdim_pad = w_packed.shape[0] - (H1 + H2)

    if state_dim != sdim_pad:  # zero-pad feature dim to an 8-multiple
        state = jnp.pad(state, ((0, 0), (0, sdim_pad - state_dim)))

    # Small B: single block (no per-step overhead). Large B: 256-row batch
    # tiles on a "parallel" grid axis so v7x's two TensorCores split the batch.
    if B > 256 and B % 256 == 0:
        tile_b = 256
    else:
        tile_b = B
    grid = (B // tile_b,)

    out = pl.pallas_call(
        functools.partial(actor_critic_kernel, sdim_pad=sdim_pad),
        out_shape=jax.ShapeDtypeStruct((B, HEAD_PAD), jnp.float32),
        grid=grid,
        in_specs=[
            pl.BlockSpec((tile_b, sdim_pad), lambda i: (i, 0)),
            pl.BlockSpec(w_packed.shape, lambda i: (0, 0)),  # weights resident across tiles
            pl.BlockSpec(b_packed.shape, lambda i: (0, 0)),
        ],
        out_specs=pl.BlockSpec((tile_b, HEAD_PAD), lambda i: (i, 0)),
        compiler_params=pltpu.CompilerParams(
            dimension_semantics=("parallel",)),
    )(state, w_packed, b_packed)

    logits = out[:, :action_dim]
    value = out[:, action_dim:action_dim + 1]
    return logits, value


def init_params(key, state_dim, action_dim):
    """nn.Linear-style init (uniform +/- 1/sqrt(fan_in)); weights stored (in, out)."""
    def linear(k, fan_in, fan_out):
        kw, kb = jax.random.split(k)
        bound = 1.0 / jnp.sqrt(fan_in)
        w = jax.random.uniform(kw, (fan_in, fan_out), jnp.float32, -bound, bound)
        b = jax.random.uniform(kb, (1, fan_out), jnp.float32, -bound, bound)
        return w, b

    k1, k2, k3, k4 = jax.random.split(key, 4)
    w1, b1 = linear(k1, state_dim, H1)
    w2, b2 = linear(k2, H1, H2)
    wa, ba = linear(k3, H2, action_dim)
    wc, bc = linear(k4, H2, 1)
    return dict(w1=w1, b1=b1, w2=w2, b2=b2, wa=wa, ba=ba, wc=wc, bc=bc)


def pack_params(p, state_dim, action_dim):
    """Pack all weights into one bf16 slab and all biases into one f32 slab."""
    assert action_dim + 1 <= HEAD_PAD
    sdim_pad = _round_up(state_dim, 8)
    rows = sdim_pad + H1 + H2

    w = jnp.zeros((rows, H1), jnp.float32)
    w = w.at[:state_dim, :].set(p["w1"])
    w = w.at[sdim_pad:sdim_pad + H1, :H2].set(p["w2"])
    r2 = sdim_pad + H1
    w = w.at[r2:r2 + H2, :action_dim].set(p["wa"])                 # fused head: actor
    w = w.at[r2:r2 + H2, action_dim:action_dim + 1].set(p["wc"])   # fused head: critic
    w_packed = w.astype(jnp.bfloat16)

    b = jnp.zeros((3, H1), jnp.float32)
    b = b.at[0, :].set(p["b1"][0])
    b = b.at[1, :H2].set(p["b2"][0])
    b = b.at[2, :action_dim].set(p["ba"][0])
    b = b.at[2, action_dim].set(p["bc"][0, 0])
    return w_packed, b


def reference_forward_mixed(state, p):
    """Mirror of the kernel math: bf16 matmul operands, f32 accumulation."""
    bf = jnp.bfloat16
    def mm(x, w):
        return jnp.dot(x.astype(bf), w.astype(bf),
                       preferred_element_type=jnp.float32)
    h1 = jnp.maximum(mm(state, p["w1"]) + p["b1"], 0.0)
    h2 = jnp.maximum(mm(h1, p["w2"]) + p["b2"], 0.0)
    return mm(h2, p["wa"]) + p["ba"], mm(h2, p["wc"]) + p["bc"]


def reference_forward_f32(state, p):
    """Original full-f32 module semantics."""
    h1 = jnp.maximum(state @ p["w1"] + p["b1"], 0.0)
    h2 = jnp.maximum(h1 @ p["w2"] + p["b2"], 0.0)
    return h2 @ p["wa"] + p["ba"], h2 @ p["wc"] + p["bc"]


if __name__ == "__main__":
    key = jax.random.PRNGKey(0)
    k_state, k_params, k_big = jax.random.split(key, 3)

    batch, state_dim, action_dim = 8, 16, 4
    state = jax.random.normal(k_state, (batch, state_dim), jnp.float32)
    params = init_params(k_params, state_dim, action_dim)
    w_packed, b_packed = pack_params(params, state_dim, action_dim)

    logits, value = actor_critic_forward(state, w_packed, b_packed, action_dim)
    logits = jax.block_until_ready(logits)
    value = jax.block_until_ready(value)
    assert logits.shape == (batch, action_dim)
    assert value.shape == (batch, 1)

    # kernel vs. a reference that mirrors the kernel's mixed-precision math
    ml, mv = reference_forward_mixed(state, params)
    assert jnp.allclose(logits, ml, atol=2e-3, rtol=2e-3)
    assert jnp.allclose(value, mv, atol=2e-3, rtol=2e-3)

    # sanity check against the original f32 module semantics (bf16 weights
    # introduce <1% deviation for this net)
    fl, fv = reference_forward_f32(state, params)
    assert jnp.allclose(logits, fl, atol=5e-2, rtol=5e-2)
    assert jnp.allclose(value, fv, atol=5e-2, rtol=5e-2)

    # large-batch path: 256-row batch tiles on a "parallel" grid axis
    big_state = jax.random.normal(k_big, (512, state_dim), jnp.float32)
    bl, bv = actor_critic_forward(big_state, w_packed, b_packed, action_dim)
    bl = jax.block_until_ready(bl)
    bv = jax.block_until_ready(bv)
    rbl, rbv = reference_forward_mixed(big_state, params)
    assert jnp.allclose(bl, rbl, atol=2e-3, rtol=2e-3)
    assert jnp.allclose(bv, rbv, atol=2e-3, rtol=2e-3)

    print("KERNEL_OK")
</pallas_src>

<mosaic_0001>
module attributes {stable_mosaic.version = 11 : i64} {
  func.func @actor_critic_kernel(%arg0: i32, %arg1: memref<8x16xf32, #tpu.memory_space<vmem>>, %arg2: memref<400x256xbf16, #tpu.memory_space<vmem>>, %arg3: memref<3x256xf32, #tpu.memory_space<vmem>>, %arg4: memref<8x128xf32, #tpu.memory_space<vmem>>) attributes {dimension_semantics = [#tpu.dimension_semantics<parallel>], iteration_bounds = array<i64: 1>, scalar_prefetch = 0 : i64, scratch_operands = 0 : i64, tpu.core_type = #tpu.core_type<tc>, window_params = [{transform_indices = @transform_0, window_bounds = array<i64: 8, 16>}, {pipeline_mode = #tpu.pipeline_mode<synchronous>, transform_indices = @transform_1, window_bounds = array<i64: 400, 256>}, {pipeline_mode = #tpu.pipeline_mode<synchronous>, transform_indices = @transform_2, window_bounds = array<i64: 3, 256>}, {transform_indices = @transform_3, window_bounds = array<i64: 8, 128>}]} {
    %c0 = arith.constant 0 : index
    %c0_0 = arith.constant 0 : index
    %0 = vector.load %arg1[%c0, %c0_0] : memref<8x16xf32, #tpu.memory_space<vmem>>, vector<8x16xf32>
    %1 = arith.truncf %0 : vector<8x16xf32> to vector<8x16xbf16>
    %c0_1 = arith.constant 0 : index
    %c0_2 = arith.constant 0 : index
    %2 = vector.load %arg2[%c0_1, %c0_2] : memref<400x256xbf16, #tpu.memory_space<vmem>>, vector<16x256xbf16>
    %cst = arith.constant dense<0.000000e+00> : vector<8x256xf32>
    %3 = tpu.matmul %1, %2, %cst {dimension_numbers = #tpu.dot_dimension_numbers<[1], [0], [0], [1], [0, 0, 1, 1], [], []>} : vector<8x16xbf16>, vector<16x256xbf16>, vector<8x256xf32> -> vector<8x256xf32>
    %c0_3 = arith.constant 0 : index
    %c0_4 = arith.constant 0 : index
    %4 = vector.load %arg3[%c0_3, %c0_4] : memref<3x256xf32, #tpu.memory_space<vmem>>, vector<1x256xf32>
    %5 = vector.broadcast %4 : vector<1x256xf32> to vector<8x256xf32>
    %6 = arith.addf %3, %5 : vector<8x256xf32>
    %cst_5 = arith.constant 0.000000e+00 : f32
    %7 = vector.broadcast %cst_5 : f32 to vector<8x256xf32>
    %8 = arith.maximumf %6, %7 : vector<8x256xf32>
    %9 = arith.truncf %8 : vector<8x256xf32> to vector<8x256xbf16>
    %c16 = arith.constant 16 : index
    %c0_6 = arith.constant 0 : index
    %10 = vector.load %arg2[%c16, %c0_6] : memref<400x256xbf16, #tpu.memory_space<vmem>>, vector<256x128xbf16>
    %cst_7 = arith.constant dense<0.000000e+00> : vector<8x128xf32>
    %11 = tpu.matmul %9, %10, %cst_7 {dimension_numbers = #tpu.dot_dimension_numbers<[1], [0], [0], [1], [0, 0, 1, 1], [], []>} : vector<8x256xbf16>, vector<256x128xbf16>, vector<8x128xf32> -> vector<8x128xf32>
    %c1 = arith.constant 1 : index
    %c0_8 = arith.constant 0 : index
    %12 = vector.load %arg3[%c1, %c0_8] : memref<3x256xf32, #tpu.memory_space<vmem>>, vector<1x128xf32>
    %13 = vector.broadcast %12 : vector<1x128xf32> to vector<8x128xf32>
    %14 = arith.addf %11, %13 : vector<8x128xf32>
    %cst_9 = arith.constant 0.000000e+00 : f32
    %15 = vector.broadcast %cst_9 : f32 to vector<8x128xf32>
    %16 = arith.maximumf %14, %15 : vector<8x128xf32>
    %17 = arith.truncf %16 : vector<8x128xf32> to vector<8x128xbf16>
    %c272 = arith.constant 272 : index
    %c0_10 = arith.constant 0 : index
    %18 = vector.load %arg2[%c272, %c0_10] : memref<400x256xbf16, #tpu.memory_space<vmem>>, vector<128x128xbf16>
    %cst_11 = arith.constant dense<0.000000e+00> : vector<8x128xf32>
    %19 = tpu.matmul %17, %18, %cst_11 {dimension_numbers = #tpu.dot_dimension_numbers<[1], [0], [0], [1], [0, 0, 1, 1], [], []>} : vector<8x128xbf16>, vector<128x128xbf16>, vector<8x128xf32> -> vector<8x128xf32>
    %c2 = arith.constant 2 : index
    %c0_12 = arith.constant 0 : index
    %20 = vector.load %arg3[%c2, %c0_12] : memref<3x256xf32, #tpu.memory_space<vmem>>, vector<1x128xf32>
    %21 = vector.broadcast %20 : vector<1x128xf32> to vector<8x128xf32>
    %22 = arith.addf %19, %21 : vector<8x128xf32>
    %c0_13 = arith.constant 0 : index
    %c0_14 = arith.constant 0 : index
    %23 = vector.load %arg4[%c0_13, %c0_14] : memref<8x128xf32, #tpu.memory_space<vmem>>, vector<8x128xf32>
    tpu.vector_store %arg4[%c0_13, %c0_14], %22 {strides = array<i32>} : memref<8x128xf32, #tpu.memory_space<vmem>>, vector<8x128xf32>,
    return
  }
  func.func @transform_0(%arg0: i32) -> (i32, i32) {
    %c0_i32 = arith.constant 0 : i32
    %c0_i32_0 = arith.constant 0 : i32
    return %arg0, %c0_i32 : i32, i32
  }
  func.func @transform_1(%arg0: i32) -> (i32, i32) {
    %c0_i32 = arith.constant 0 : i32
    %c0_i32_0 = arith.constant 0 : i32
    %c0_i32_1 = arith.constant 0 : i32
    return %c0_i32, %c0_i32_0 : i32, i32
  }
  func.func @transform_2(%arg0: i32) -> (i32, i32) {
    %c0_i32 = arith.constant 0 : i32
    %c0_i32_0 = arith.constant 0 : i32
    %c0_i32_1 = arith.constant 0 : i32
    return %c0_i32, %c0_i32_0 : i32, i32
  }
  func.func @transform_3(%arg0: i32) -> (i32, i32) {
    %c0_i32 = arith.constant 0 : i32
    %c0_i32_0 = arith.constant 0 : i32
    return %arg0, %c0_i32 : i32, i32
  }
}

</mosaic_0001>

<bundles_post_ra>
// kernel: tpu_custom_call.1
= control target key start
LH: loop header
LB: loop body
LE: loop exit
PB: predicated region body
PF: predicated region fallthrough
CT: control target
= control target key end

     0   :  { %8 = vsyncpa [#allocation3], 0  ;;  %s716_s0 = inlined_call_operand.hbm [shape: f32[8,16], index: 0, kind: input, shape index: {}]   ;;  %s717_s1 = inlined_call_operand.hbm [shape: bf16[400,256], index: 1, kind: input, shape index: {}]   ;;  %s718_s2 = inlined_call_operand.hbm [shape: f32[3,256], index: 2, kind: input, shape index: {}]   ;;  %s719_s3 = inlined_call_operand.hbm [shape: f32[8,128], index: 3, kind: output, shape index: {}]  }
   0x1   :  { %9 = vsyncpa [#allocation6], 0 }
   0x2   :  { %10 = vsyncpa [#allocation4], 0  ;;  %s639_s12 = smov [#allocation5]   ;;  %s545_s16 = scalar_lea.hbm %s717_s1, 6400 }
   0x3   :  { %s26_s13 = sshll.u32 %s639_s12, 4  ;;  %p546_p0 = scmp.ne.s32.totalorder %s717_s1, %s545_s16  ;;  %s27_s13 = int_to_ptr.vmem [resolvable:$true] %s26_s13 }
   0x4   :  { %p549_p1 = scmp.lt.u32.totalorder %s545_s16, %s717_s1 }
   0x6   :  { %p551_p2 = pnand %p549_p1, %p546_p0 }
   0x8   :  { %554 = shalt.err (!%p551_p2)
}
   0x9   :  { %s555_s21 = scalar_lea.vmem %s27_s13, 6400  ;;  %p560_p4 = scmp.lt.s32.totalorder %s27_s13, %s27_s13 }
   0xa   :  { %p556_p3 = scmp.ne.s32.totalorder %s27_s13, %s555_s21  ;;  %p561_p5 = scmp.lt.s32.totalorder %s555_s21, %s555_s21 }
   0xc   :  { %p562_p6 = por %p561_p5, %p560_p4 }
   0xe   :  { %p563_p7 = pnand %p562_p6, %p556_p3 }
  0x10   :  { %566 = shalt.err (!%p563_p7)
}
  0x11   :  { %s640_s22 = smov 128   ;;  %s641_s23 = smov 8  }
  0x12   :  { %32 = dma.hbm_to_vmem [thread:$0]  %s717_s1, 6400, %s27_s13, [#allocation6], %s640_s22, %s640_s22, %s641_s23  }
  0x13   :  { %s642_s26 = smov [#allocation2]   ;;  %s643_s28 = smov [#allocation7]  }
  0x14   :  { %s17_s27 = sshll.u32 %s642_s26, 4  ;;  %s39_s29 = sshll.u32 %s643_s28, 4  ;;  %s18_s27 = int_to_ptr.vmem [resolvable:$true] %s17_s27  ;;  %s40_s29 = int_to_ptr.vmem [resolvable:$true] %s39_s29 }
  0x15   :  { %s567_s5 = scalar_lea.hbm %s716_s0, 128 }
  0x16   :  { %p568_p8 = scmp.ne.s32.totalorder %s716_s0, %s567_s5  ;;  %p571_p9 = scmp.lt.u32.totalorder %s567_s5, %s716_s0 }
  0x18   :  { %p573_p10 = pnand %p571_p9, %p568_p8 }
  0x1a   :  { %576 = shalt.err (!%p573_p10)
}
  0x1b   :  { %s577_s1 = scalar_lea.vmem %s18_s27, 128  ;;  %p582_p12 = scmp.lt.s32.totalorder %s18_s27, %s18_s27 }
  0x1c   :  { %p578_p11 = scmp.ne.s32.totalorder %s18_s27, %s577_s1  ;;  %p583_p13 = scmp.lt.s32.totalorder %s577_s1, %s577_s1 }
  0x1e   :  { %p584_p0 = por %p583_p13, %p582_p12 }
  0x20   :  { %p585_p1 = pnand %p584_p0, %p578_p11 }
  0x22   :  { %588 = shalt.err (!%p585_p1)
}
  0x23   :  { %20 = dma.hbm_to_vmem [thread:$0]  %s716_s0, 128, %s18_s27, [#allocation3]  }
  0x24   :  { %s589_s14 = scalar_lea.hbm %s718_s2, 128 }
  0x25   :  { %p590_p2 = scmp.ne.s32.totalorder %s718_s2, %s589_s14  ;;  %p593_p3 = scmp.lt.u32.totalorder %s589_s14, %s718_s2 }
  0x27   :  { %p595_p4 = pnand %p593_p3, %p590_p2 }
  0x29   :  { %598 = shalt.err (!%p595_p4)
}
  0x2a   :  { %s599_s19 = scalar_lea.vmem %s40_s29, 128  ;;  %p604_p6 = scmp.lt.s32.totalorder %s40_s29, %s40_s29 }
  0x2b   :  { %p600_p5 = scmp.ne.s32.totalorder %s40_s29, %s599_s19  ;;  %p605_p7 = scmp.lt.s32.totalorder %s599_s19, %s599_s19 }
  0x2d   :  { %p606_p8 = por %p605_p7, %p604_p6 }
  0x2f   :  { %p607_p9 = pnand %p606_p8, %p600_p5 }
  0x31   :  { %610 = shalt.err (!%p607_p9)
}
  0x32   :  { %42 = dma.hbm_to_vmem [thread:$0]  %s718_s2, 128, %s40_s29, [#allocation6]  }
  0x33   :  { %633 = dma.done.wait [#allocation3], 128  }
  0x34   :  { %634 = vsyncadd [#allocation3], 4294967168 }
  0x35   :  { %635 = dma.done.wait [#allocation6], 6528  }
  0x36   :  { %636 = vsyncadd [#allocation6], 4294960768  ;;  %v644_v0 = vmov 0   ;;  %v518_v1 = vld [vmem:[#allocation5 + $0x4] ss:$8 sps:$4 sm:$0xff]   ;;  %v53_v3 = vld [vmem:[#allocation2] sm:$0xff]  ;;  %v59_v28 = vlaneseq }
  0x37   :  { %115 = vmatprep.mubr.bf16.mxu0 %v644_v0  ;;  %v520_v2 = vld [vmem:[#allocation5] ss:$8 sps:$4 sm:$0xff]   ;;  %vm79_vm0 = vcmask 130048   ;;  %83 = vmatprep.subr.bf16.mxu0 %v518_v1  ;;  %v54_v4 = vpack.c.bf16 %v53_v3, %v53_v3  ;;  %v521_v5 = vld [vmem:[#allocation5 + $0x90] ss:$8 sps:$4 sm:$0xff]   ;;  %v645_v22 = vmov 0.0  }
  0x38   :  { %84 = vmatpush1.bf16.msra.mxu0 %v520_v2  ;;  %v522_v6 = vld [vmem:[#allocation5 + $0x10] ss:$8 sps:$4 sm:$0xff]   ;;  %458 = vmatprep.subr.bf16.mxu1 %v521_v5  ;;  %v523_v7 = vld [vmem:[#allocation5 + $0xa0] ss:$8 sps:$4 sm:$0xff]   ;;  %v60_v29 = vshrl.u32 %v59_v28, 7  ;;  %vm646_vm1 = vmmov 0  }
  0x39   :  { %459 = vmatpush3.bf16.msra.mxu1 %v522_v6  ;;  %v524_v8 = vld [vmem:[#allocation5 + $0x20] ss:$8 sps:$4 sm:$0xff]   ;;  %v525_v9 = vld [vmem:[#allocation5 + $0xb0] ss:$8 sps:$4 sm:$0xff]   ;;  %489 = vmatprep.subr.bf16.mxu0 %v645_v22  ;;  %s647_s2 = smov [#allocation8]  }
  0x3a   :  { %460 = vmatprep.subr.bf16.mxu1 %v523_v7  ;;  %v526_v10 = vld [vmem:[#allocation5 + $0x30] ss:$8 sps:$4 sm:$0xff]   ;;  %v527_v11 = vld [vmem:[#allocation5 + $0xc0] ss:$8 sps:$4 sm:$0xff]   ;;  %v61_v30 = vsub.s32 0, %v60_v29  ;;  %v65_v32 = vsub.s32 1, %v60_v29 }
  0x3b   :  { %431 = vmatmul.mubr.msk.bf16.vlgmr.msra.gmra.mrb[0].mxu0 %vm79_vm0, %v54_v4  ;;  %v528_v12 = vld [vmem:[#allocation5 + $0x40] ss:$8 sps:$4 sm:$0xff]   ;;  %v529_v13 = vld [vmem:[#allocation5 + $0xd0] ss:$8 sps:$4 sm:$0xff]   ;;  %s419_s21 = sshll.u32 %s647_s2, 4  ;;  %s420_s21 = int_to_ptr.vmem [resolvable:$true] %s419_s21 }
  0x3c   :  { %v530_v14 = vld [vmem:[#allocation5 + $0x50] ss:$8 sps:$4 sm:$0xff]   ;;  %v531_v15 = vld [vmem:[#allocation5 + $0xe0] ss:$8 sps:$4 sm:$0xff]   ;;  %505 = vmatprep.mubr.msk.bf16.mxu0 %vm646_vm1, %v645_v22  ;;  %s611_s22 = scalar_lea.vmem %s420_s21, 128  ;;  %p616_p11 = scmp.lt.s32.totalorder %s420_s21, %s420_s21 }
  0x3d   :  { %461 = vmatpush3.bf16.msra.mxu1 %v524_v8  ;;  %v532_v16 = vld [vmem:[#allocation5 + $0x60] ss:$8 sps:$4 sm:$0xff]   ;;  %v533_v17 = vld [vmem:[#allocation5 + $0xf0] ss:$8 sps:$4 sm:$0xff]   ;;  %p612_p10 = scmp.ne.s32.totalorder %s420_s21, %s611_s22  ;;  %p617_p12 = scmp.lt.s32.totalorder %s611_s22, %s611_s22 }
  0x3e   :  { %462 = vmatprep.subr.bf16.mxu1 %v525_v9  ;;  %v534_v18 = vld [vmem:[#allocation5 + $0x70] ss:$8 sps:$4 sm:$0xff]   ;;  %v535_v19 = vld [vmem:[#allocation5 + $0x100] ss:$8 sps:$4 sm:$0xff]  }
  0x3f   :  { %v536_v20 = vld [vmem:[#allocation5 + $0x80] ss:$8 sps:$4 sm:$0xff]   ;;  %v537_v21 = vld [vmem:[#allocation5 + $0x110] ss:$8 sps:$4 sm:$0xff]   ;;  %p618_p13 = por %p617_p12, %p616_p11 }
  0x40   :  { %490 = vmatpush3.bf16.msra.mxu0 %v537_v21  ;;  %v538_v23 = vld [vmem:[#allocation5 + $0x120] ss:$8 sps:$4 sm:$0xff]   ;;  %v539_v24 = vld [vmem:[#allocation5 + $0x130] ss:$8 sps:$4 sm:$0xff]  }
  0x41   :  { %463 = vmatpush3.bf16.msra.mxu1 %v526_v10  ;;  %491 = vmatprep.subr.bf16.mxu0 %v645_v22  ;;  %v540_v25 = vld [vmem:[#allocation5 + $0x140] ss:$8 sps:$4 sm:$0xff]   ;;  %v541_v26 = vld [vmem:[#allocation5 + $0x150] ss:$8 sps:$4 sm:$0xff]   ;;  %p619_p0 = pnand %p618_p13, %p612_p10 }
  0x42   :  { %464 = vmatprep.subr.bf16.mxu1 %v527_v11  ;;  %v542_v27 = vld [vmem:[#allocation5 + $0x160] ss:$8 sps:$4 sm:$0xff]   ;;  %v57_v31 = vld [vmem:[#allocation7] ss:$4 sm:$0x3] }
  0x43   :  { %v62_v33 = vrot.slane %v57_v31, %v61_v30  ;;  %v66_v34 = vrot.slane %v57_v31, %v65_v32  ;;  %v543_v45 = vld [vmem:[#allocation5 + $0x170] ss:$8 sps:$4 sm:$0xff]   ;;  %v544_v46 = vld [vmem:[#allocation5 + $0x180] ss:$8 sps:$4 sm:$0xff]  }
  0x44   :  { %492 = vmatpush3.bf16.msra.mxu0 %v538_v23  ;;  %v432_v48 = vld [vmem:[#allocation7 + $0x1] ss:$0 sm:$0xff]  ;;  %v449_v56 = vld [vmem:[#allocation7 + $0x2] ss:$0 sm:$0xff] }
  0x45   :  { %465 = vmatpush3.bf16.msra.mxu1 %v528_v12  ;;  %493 = vmatprep.subr.bf16.mxu0 %v645_v22 }
  0x46   :  { %466 = vmatprep.subr.bf16.mxu1 %v529_v13 }
  0x48   :  { %494 = vmatpush3.bf16.msra.mxu0 %v539_v24 }
  0x49   :  { %467 = vmatpush3.bf16.msra.mxu1 %v530_v14  ;;  %495 = vmatprep.subr.bf16.mxu0 %v645_v22 }
  0x4a   :  { %468 = vmatprep.subr.bf16.mxu1 %v531_v15 }
  0x4c   :  { %496 = vmatpush3.bf16.msra.mxu0 %v540_v25 }
  0x4d   :  { %469 = vmatpush3.bf16.msra.mxu1 %v532_v16  ;;  %497 = vmatprep.subr.bf16.mxu0 %v645_v22 }
  0x4e   :  { %470 = vmatprep.subr.bf16.mxu1 %v533_v17 }
  0x50   :  { %498 = vmatpush3.bf16.msra.mxu0 %v541_v26 }
  0x51   :  { %471 = vmatpush3.bf16.msra.mxu1 %v534_v18  ;;  %499 = vmatprep.subr.bf16.mxu0 %v645_v22 }
  0x52   :  { %472 = vmatprep.subr.bf16.mxu1 %v535_v19 }
  0x54   :  { %500 = vmatpush3.bf16.msra.mxu0 %v542_v27 }
  0x55   :  { %473 = vmatpush3.bf16.msra.mxu1 %v536_v20  ;;  %501 = vmatprep.subr.bf16.mxu0 %v645_v22 }
  0x58   :  { %502 = vmatpush3.bf16.msra.mxu0 %v543_v45 }
  0x59   :  { %503 = vmatprep.subr.bf16.mxu0 %v645_v22 }
  0x5c   :  { %504 = vmatpush3.bf16.msra.mxu0 %v544_v46 }
 0x10e   :  { %v117_v35 = vpop.f32.mrb[0].mxu0 }
 0x10f   :  { %v118_v36 = vadd.f32 %v117_v35, %v62_v33  ;;  %v119_v37 = vpop.f32.mrb[1].mxu0 }
 0x110   :  { %v120_v38 = vadd.f32 %v119_v37, %v66_v34  ;;  %v121_v39 = vpop.f32.mrb[2].mxu0 }
 0x111   :  { %v124_v40 = vmax.f32 %v118_v36, 0.0  ;;  %v122_v41 = vpop.f32.mrb[3].mxu0 }
 0x112   :  { %v125_v42 = vmax.f32 %v120_v38, 0.0 }
 0x113   :  { %v126_v44 = vpack.c.bf16 %v124_v40, %v124_v40 }
 0x114   :  { %v127_v43 = vpack.c.bf16 %v125_v42, %v125_v42 }
 0x116   :  { %293 = vmatprep.mubr.bf16.mxu1 %v127_v43 }
 0x117   :  { %294 = vmatmul.mubr.bf16.vlgmr.msra.gmra.mrb[0].mxu1 %v126_v44 }
 0x1ea   :  { %v474_v47 = vpop.f32.mrb[0].mxu1 }
 0x1eb   :  { %v475_v49 = vpop.f32.mrb[1].mxu1 }
 0x1ec   :  { %v476_v50 = vadd.f32 %v475_v49, %v474_v47  ;;  %v477_v51 = vpop.f32.mrb[2].mxu1 }
 0x1ed   :  { %v478_v52 = vpop.f32.mrb[3].mxu1 }
 0x1ee   :  { %v296_v53 = vadd.f32 %v476_v50, %v432_v48 }
 0x1f0   :  { %v301_v54 = vmax.f32 %v296_v53, 0.0 }
 0x1f2   :  { %v302_v55 = vpack.c.bf16 %v301_v54, %v301_v54 }
 0x1f4   :  { %506 = vmatmul.mubr.bf16.vlgmr.msra.gmra.mrb[4].mxu0 %v302_v55 }
 0x2c7   :  { %v406_v57 = vpop.f32.mrb[4].mxu0 }
 0x2c8   :  { %v407_v58 = vadd.f32 %v449_v56, %v406_v57  ;;  %v507_v59 = vpop.f32.mrb[5].mxu0 }
 0x2c9   :  { %v409_v60 = vpop.f32.mrb[6].mxu0 }
 0x2ca   :  { %412 = vst [vmem:[#allocation8] sm:$0xff] %v407_v58  ;;  %v508_v61 = vpop.f32.mrb[7].mxu0 }
 0x2cb   :  { %622 = shalt.err (!%p619_p0)
}
 0x2cc   :  { %s623_s25 = scalar_lea.hbm %s719_s3, 128 }
 0x2cd   :  { %p624_p1 = scmp.ne.s32.totalorder %s719_s3, %s623_s25  ;;  %p627_p2 = scmp.lt.u32.totalorder %s623_s25, %s719_s3 }
 0x2cf   :  { %p629_p3 = pnand %p627_p2, %p624_p1 }
 0x2d1   :  { %632 = shalt.err (!%p629_p3)
}
 0x2d2   :  { %422 = dma.vmem_to_hbm [thread:$0]  %s420_s21, 128, %s719_s3, [#allocation4]  }
 0x2d3   :  { %637 = dma.done.wait [#allocation4], 128  }
 0x2d4   :  { %638 = vsyncadd [#allocation4], 4294967168 }
 0x2d5   :  { %426 = vsyncpa [#allocation3], 1 }
 0x2d6   :  { %427 = vsyncpa [#allocation6], 1 }
 0x2d7   :  { %428 = vsyncpa [#allocation4], 1 }

</bundles_post_ra>
